<compile_context>
chip_gen: v7x
topology: tpu7x:2x2x1
jax: 0.10.0
libtpu: 0.0.40
codegen_flags: <defaults>
</compile_context>

<pallas_src>
import functools

import jax
import jax.numpy as jnp
from jax.experimental import pallas as pl
from jax.experimental.pallas import tpu as pltpu

LANES = 128
SUBLANES = 8
NUM_SUMS = 6
DEFAULT_BLOCK_ROWS = 4096      # (4096, 128) f32 tile = 2 MiB per input/buffer
VMEM_LIMIT_BYTES = 48 << 20    # safe ceiling on v5e/v6e (128 MiB) and v7x (64 MiB)


def _round_up(x, m):
    return (x + m - 1) // m * m


def _partial_slabs(pred, gt, dst1, dst2, row_mask=None):
    """Six (8, 128) partial-sum slabs for one (rows, 128) tile (f32 accum)."""
    pred = pred.astype(jnp.float32)
    gt = gt.astype(jnp.float32)
    dst1 = dst1.astype(jnp.float32)
    dst2 = dst2.astype(jnp.float32)
    if row_mask is not None:
        zero = jnp.float32(0.0)
        pred = jnp.where(row_mask, pred, zero)
        gt = jnp.where(row_mask, gt, zero)
        dst1 = jnp.where(row_mask, dst1, zero)
        dst2 = jnp.where(row_mask, dst2, zero)

    # Stable BCE-with-logits, reduction='none':
    #   sp  = softplus(-x) = log1p(exp(-|x|)) + max(-x, 0)
    #   bce = (1 - z) * x + sp
    sp = jnp.log1p(jnp.exp(-jnp.abs(pred))) + jnp.maximum(-pred, 0.0)
    bce = (1.0 - gt) * pred + sp
    if row_mask is not None:
        bce = jnp.where(row_mask, bce, jnp.float32(0.0))
    gb = gt * bce              # gt * bce
    ngb = bce - gb             # (1 - gt) * bce

    def red(x):                # (rows,128) -> (8,128); pure VALU vreg adds
        return jnp.sum(
            x.reshape(x.shape[0] // SUBLANES, SUBLANES, LANES), axis=0)

    return (red(gt), red(bce), red(gt * sp), red(gb),
            red(dst2 * gb), red(dst1 * ngb))


def _bce_partials_kernel(pred_ref, gt_ref, dst1_ref, dst2_ref, out_ref, *,
                         block_rows, tail_take_rows, tail_valid_rows):
    def emit(take, valid):
        row_mask = None
        if valid < take:       # ragged rows: mask stale/OOB rows to zero
            row_mask = (jax.lax.broadcasted_iota(
                jnp.int32, (take, LANES), 0) < valid)
        slabs = _partial_slabs(pred_ref[:take], gt_ref[:take],
                               dst1_ref[:take], dst2_ref[:take],
                               row_mask=row_mask)
        for q, slab in enumerate(slabs):
            out_ref[0, q * SUBLANES:(q + 1) * SUBLANES, :] = slab

    if tail_take_rows == block_rows and tail_valid_rows == block_rows:
        emit(block_rows, block_rows)          # grid divides evenly
    else:
        last = pl.num_programs(0) - 1

        @pl.when(pl.program_id(0) < last)
        def _():
            emit(block_rows, block_rows)

        @pl.when(pl.program_id(0) == last)
        def _():
            emit(tail_take_rows, tail_valid_rows)


def _elem_sums(p, g, d1, d2):
    """Plain-JAX six sums for a tiny (<=127 element) remainder."""
    p = p.astype(jnp.float32)
    g = g.astype(jnp.float32)
    d1 = d1.astype(jnp.float32)
    d2 = d2.astype(jnp.float32)
    sp = jnp.log1p(jnp.exp(-jnp.abs(p))) + jnp.maximum(-p, 0.0)
    bce = (1.0 - g) * p + sp
    gb = g * bce
    ngb = bce - gb
    return jnp.stack([jnp.sum(g), jnp.sum(bce), jnp.sum(g * sp),
                      jnp.sum(gb), jnp.sum(d2 * gb), jnp.sum(d1 * ngb)])


def _finalize(sums, total_n):
    s_gt, s_bce, s_gsp, s_gb, s_d2gb, s_d1nb = (sums[i] for i in range(NUM_SUMS))
    n = jnp.float32(total_n)
    eps = jnp.float32(1e-10)
    count_pos = s_gt + eps
    count_neg = n - s_gt
    beta = count_neg / count_pos
    beta_back = count_pos / (count_pos + count_neg)
    # BCEWithLogitsLoss(pos_weight=beta): (1-z)x + (1 + (beta-1)z)*sp
    bce1_mean = ((s_bce - s_gsp) + beta * s_gsp) / n
    # dst_loss: beta*(1+dst2)*gt*bce + (1+dst1)*(1-gt)*bce
    bce2_mean = (beta * (s_gb + s_d2gb) + (s_bce - s_gb) + s_d1nb) / n
    return beta_back * bce1_mean + beta_back * bce2_mean


def my_bceloss12_n(pred, gt, dst1, dst2, *, block_rows=None):
    """Pallas implementation of MyBceloss12_n.forward. Returns a scalar."""
    assert pred.shape == gt.shape == dst1.shape == dst2.shape
    total_n = int(pred.size)
    assert total_n > 0

    flats = [jnp.ravel(x) for x in (pred, gt, dst1, dst2)]   # free (contiguous)
    rem = total_n % LANES
    aligned_n = total_n - rem

    sums = jnp.zeros((NUM_SUMS,), jnp.float32)

    if aligned_n:
        rows = aligned_n // LANES
        if block_rows is None:
            block_rows = DEFAULT_BLOCK_ROWS
        block_rows = max(SUBLANES,
                         min(_round_up(block_rows, SUBLANES),
                             _round_up(rows, SUBLANES)))
        num_blocks = -(-rows // block_rows)
        tail_valid = rows - (num_blocks - 1) * block_rows      # 1..block_rows
        tail_take = min(block_rows, _round_up(tail_valid, SUBLANES))

        def prep(f):
            # rem == 0 (common case): reshape is a free bitcast, zero copies.
            # rem != 0: slice the 128-aligned prefix for the kernel; the
            # <=127-element remainder is summed in plain JAX below.
            if rem:
                f = f[:aligned_n]
            return f.reshape(rows, LANES)

        inputs = [prep(f) for f in flats]
        itemsize_sum = sum(jnp.dtype(x.dtype).itemsize for x in inputs)
        cost = pl.CostEstimate(
            flops=20 * aligned_n,
            transcendentals=2 * aligned_n,
            bytes_accessed=rows * LANES * itemsize_sum
            + num_blocks * NUM_SUMS * SUBLANES * LANES * 4)

        in_spec = pl.BlockSpec((block_rows, LANES), lambda i: (i, 0))
        partials = pl.pallas_call(
            functools.partial(_bce_partials_kernel,
                              block_rows=block_rows,
                              tail_take_rows=tail_take,
                              tail_valid_rows=tail_valid),
            out_shape=jax.ShapeDtypeStruct(
                (num_blocks, NUM_SUMS * SUBLANES, LANES), jnp.float32),
            grid_spec=pltpu.PrefetchScalarGridSpec(
                num_scalar_prefetch=0,
                grid=(num_blocks,),
                in_specs=[in_spec] * 4,
                out_specs=pl.BlockSpec((1, NUM_SUMS * SUBLANES, LANES),
                                       lambda i: (i, 0, 0)),
            ),
            compiler_params=pltpu.CompilerParams(
                dimension_semantics=("parallel",),
                vmem_limit_bytes=VMEM_LIMIT_BYTES),
            cost_estimate=cost,
        )(*inputs)

        sums = sums + jnp.sum(
            partials.reshape(num_blocks, NUM_SUMS, SUBLANES, LANES),
            axis=(0, 2, 3))

    if rem:
        sums = sums + _elem_sums(*[f[aligned_n:] for f in flats])

    return _finalize(sums, total_n)


def ref_loss(pred, gt, dst1, dst2):
    """Plain-JAX reference matching the PyTorch forward."""
    pred = pred.astype(jnp.float32)
    gt = gt.astype(jnp.float32)
    dst1 = dst1.astype(jnp.float32)
    dst2 = dst2.astype(jnp.float32)
    eps = 1e-10
    count_pos = jnp.sum(gt) * 1.0 + eps
    count_neg = jnp.sum(1.0 - gt) * 1.0
    beta = count_neg / count_pos
    beta_back = count_pos / (count_pos + count_neg)
    sp = jnp.log1p(jnp.exp(-jnp.abs(pred))) + jnp.maximum(-pred, 0.0)
    bce = (1.0 - gt) * pred + sp
    dst_loss = beta * (1.0 + dst2) * gt * bce + (1.0 + dst1) * (1.0 - gt) * bce
    bce1_elem = (1.0 - gt) * pred + (1.0 + (beta - 1.0) * gt) * sp
    return beta_back * jnp.mean(bce1_elem) + beta_back * jnp.mean(dst_loss)


if __name__ == "__main__":
    loss_fn = jax.jit(my_bceloss12_n, static_argnames=("block_rows",))

    def make_inputs(key, shape, dtype=jnp.float32):
        k1, k2, k3, k4 = jax.random.split(key, 4)
        pred = jax.random.normal(k1, shape).astype(dtype)
        gt = (jax.random.uniform(k2, shape) > 0.5).astype(dtype)
        dst1 = jax.random.uniform(k3, shape).astype(dtype)
        dst2 = jax.random.uniform(k4, shape).astype(dtype)
        return pred, gt, dst1, dst2

    def check(args, expected_rtol=1e-4, **kw):
        loss = loss_fn(*args, **kw)
        jax.block_until_ready(loss)
        expected = ref_loss(*args)
        assert jnp.allclose(loss, expected, rtol=expected_rtol, atol=1e-5), \
            (loss, expected)

    # 1) Primary case: numel multiple of 128, single full block, zero-copy path.
    check(make_inputs(jax.random.PRNGKey(0), (2, 4, 16, 16)))

    # 2) numel % 128 != 0: 128-aligned prefix in the kernel (rows=2, masked up
    #    to 8) + 44-element plain-JAX remainder.  No whole-array pad copy.
    check(make_inputs(jax.random.PRNGKey(1), (1, 3, 10, 10)))

    # 3) Ragged grid: rows (24) not a multiple of block_rows (16) -> exercises
    #    the pl.when tail-tile path (nb=2, tail rows=8, no mask needed).
    check(make_inputs(jax.random.PRNGKey(2), (1, 1, 24, 128)), block_rows=16)

    # 4) bf16 streaming + in-kernel row mask: rows=15 (not a multiple of 8).
    check(make_inputs(jax.random.PRNGKey(3), (2, 3, 20, 16), dtype=jnp.bfloat16),
          expected_rtol=1e-3)

    print("KERNEL_OK")
</pallas_src>

<mosaic_0001>
module attributes {stable_mosaic.version = 11 : i64} {
  func.func @_bce_partials_kernel(%arg0: i32, %arg1: memref<16x128xf32, #tpu.memory_space<vmem>>, %arg2: memref<16x128xf32, #tpu.memory_space<vmem>>, %arg3: memref<16x128xf32, #tpu.memory_space<vmem>>, %arg4: memref<16x128xf32, #tpu.memory_space<vmem>>, %arg5: memref<1x48x128xf32, #tpu.memory_space<vmem>>) attributes {dimension_semantics = [#tpu.dimension_semantics<parallel>], iteration_bounds = array<i64: 1>, scalar_prefetch = 0 : i64, scratch_operands = 0 : i64, tpu.core_type = #tpu.core_type<tc>, window_params = [{transform_indices = @transform_0, window_bounds = array<i64: 16, 128>}, {transform_indices = @transform_1, window_bounds = array<i64: 16, 128>}, {transform_indices = @transform_2, window_bounds = array<i64: 16, 128>}, {transform_indices = @transform_3, window_bounds = array<i64: 16, 128>}, {transform_indices = @transform_4, window_bounds = array<i64: 1, 48, 128>}]} {
    %c0 = arith.constant 0 : index
    %c0_0 = arith.constant 0 : index
    %0 = vector.load %arg1[%c0, %c0_0] : memref<16x128xf32, #tpu.memory_space<vmem>>, vector<16x128xf32>
    %c0_1 = arith.constant 0 : index
    %c0_2 = arith.constant 0 : index
    %1 = vector.load %arg2[%c0_1, %c0_2] : memref<16x128xf32, #tpu.memory_space<vmem>>, vector<16x128xf32>
    %c0_3 = arith.constant 0 : index
    %c0_4 = arith.constant 0 : index
    %2 = vector.load %arg3[%c0_3, %c0_4] : memref<16x128xf32, #tpu.memory_space<vmem>>, vector<16x128xf32>
    %c0_5 = arith.constant 0 : index
    %c0_6 = arith.constant 0 : index
    %3 = vector.load %arg4[%c0_5, %c0_6] : memref<16x128xf32, #tpu.memory_space<vmem>>, vector<16x128xf32>
    %4 = math.absf %0 : vector<16x128xf32>
    %cst = arith.constant 0.000000e+00 : f32
    %5 = vector.broadcast %cst : f32 to vector<16x128xf32>
    %6 = arith.subf %5, %4 : vector<16x128xf32>
    %7 = math.exp %6 : vector<16x128xf32>
    %8 = math.log1p %7 : vector<16x128xf32>
    %cst_7 = arith.constant 0.000000e+00 : f32
    %9 = vector.broadcast %cst_7 : f32 to vector<16x128xf32>
    %10 = arith.subf %9, %0 : vector<16x128xf32>
    %cst_8 = arith.constant 0.000000e+00 : f32
    %11 = vector.broadcast %cst_8 : f32 to vector<16x128xf32>
    %12 = arith.maximumf %10, %11 : vector<16x128xf32>
    %13 = arith.addf %8, %12 : vector<16x128xf32>
    %cst_9 = arith.constant 1.000000e+00 : f32
    %14 = vector.broadcast %cst_9 : f32 to vector<16x128xf32>
    %15 = arith.subf %14, %1 : vector<16x128xf32>
    %16 = arith.mulf %15, %0 : vector<16x128xf32>
    %17 = arith.addf %16, %13 : vector<16x128xf32>
    %18 = arith.mulf %1, %17 : vector<16x128xf32>
    %19 = arith.subf %17, %18 : vector<16x128xf32>
    %20 = vector.shape_cast %1 : vector<16x128xf32> to vector<2x8x128xf32>
    %cst_10 = arith.constant dense<0.000000e+00> : vector<8x128xf32>
    %21 = vector.multi_reduction <add>, %20, %cst_10 [0] : vector<2x8x128xf32> to vector<8x128xf32>
    %22 = vector.shape_cast %17 : vector<16x128xf32> to vector<2x8x128xf32>
    %cst_11 = arith.constant dense<0.000000e+00> : vector<8x128xf32>
    %23 = vector.multi_reduction <add>, %22, %cst_11 [0] : vector<2x8x128xf32> to vector<8x128xf32>
    %24 = arith.mulf %1, %13 : vector<16x128xf32>
    %25 = vector.shape_cast %24 : vector<16x128xf32> to vector<2x8x128xf32>
    %cst_12 = arith.constant dense<0.000000e+00> : vector<8x128xf32>
    %26 = vector.multi_reduction <add>, %25, %cst_12 [0] : vector<2x8x128xf32> to vector<8x128xf32>
    %27 = vector.shape_cast %18 : vector<16x128xf32> to vector<2x8x128xf32>
    %cst_13 = arith.constant dense<0.000000e+00> : vector<8x128xf32>
    %28 = vector.multi_reduction <add>, %27, %cst_13 [0] : vector<2x8x128xf32> to vector<8x128xf32>
    %29 = arith.mulf %3, %18 : vector<16x128xf32>
    %30 = vector.shape_cast %29 : vector<16x128xf32> to vector<2x8x128xf32>
    %cst_14 = arith.constant dense<0.000000e+00> : vector<8x128xf32>
    %31 = vector.multi_reduction <add>, %30, %cst_14 [0] : vector<2x8x128xf32> to vector<8x128xf32>
    %32 = arith.mulf %2, %19 : vector<16x128xf32>
    %33 = vector.shape_cast %32 : vector<16x128xf32> to vector<2x8x128xf32>
    %cst_15 = arith.constant dense<0.000000e+00> : vector<8x128xf32>
    %34 = vector.multi_reduction <add>, %33, %cst_15 [0] : vector<2x8x128xf32> to vector<8x128xf32>
    %c0_16 = arith.constant 0 : index
    %c0_17 = arith.constant 0 : index
    %c0_18 = arith.constant 0 : index
    %35 = vector.load %arg5[%c0_16, %c0_17, %c0_18] : memref<1x48x128xf32, #tpu.memory_space<vmem>>, vector<1x8x128xf32>
    %36 = vector.shape_cast %35 : vector<1x8x128xf32> to vector<8x128xf32>
    %37 = vector.shape_cast %21 : vector<8x128xf32> to vector<1x8x128xf32>
    tpu.vector_store %arg5[%c0_16, %c0_17, %c0_18], %37 {strides = array<i32>} : memref<1x48x128xf32, #tpu.memory_space<vmem>>, vector<1x8x128xf32>,
    %c0_19 = arith.constant 0 : index
    %c8 = arith.constant 8 : index
    %c0_20 = arith.constant 0 : index
    %38 = vector.load %arg5[%c0_19, %c8, %c0_20] : memref<1x48x128xf32, #tpu.memory_space<vmem>>, vector<1x8x128xf32>
    %39 = vector.shape_cast %38 : vector<1x8x128xf32> to vector<8x128xf32>
    %40 = vector.shape_cast %23 : vector<8x128xf32> to vector<1x8x128xf32>
    tpu.vector_store %arg5[%c0_19, %c8, %c0_20], %40 {strides = array<i32>} : memref<1x48x128xf32, #tpu.memory_space<vmem>>, vector<1x8x128xf32>,
    %c0_21 = arith.constant 0 : index
    %c16 = arith.constant 16 : index
    %c0_22 = arith.constant 0 : index
    %41 = vector.load %arg5[%c0_21, %c16, %c0_22] : memref<1x48x128xf32, #tpu.memory_space<vmem>>, vector<1x8x128xf32>
    %42 = vector.shape_cast %41 : vector<1x8x128xf32> to vector<8x128xf32>
    %43 = vector.shape_cast %26 : vector<8x128xf32> to vector<1x8x128xf32>
    tpu.vector_store %arg5[%c0_21, %c16, %c0_22], %43 {strides = array<i32>} : memref<1x48x128xf32, #tpu.memory_space<vmem>>, vector<1x8x128xf32>,
    %c0_23 = arith.constant 0 : index
    %c24 = arith.constant 24 : index
    %c0_24 = arith.constant 0 : index
    %44 = vector.load %arg5[%c0_23, %c24, %c0_24] : memref<1x48x128xf32, #tpu.memory_space<vmem>>, vector<1x8x128xf32>
    %45 = vector.shape_cast %44 : vector<1x8x128xf32> to vector<8x128xf32>
    %46 = vector.shape_cast %28 : vector<8x128xf32> to vector<1x8x128xf32>
    tpu.vector_store %arg5[%c0_23, %c24, %c0_24], %46 {strides = array<i32>} : memref<1x48x128xf32, #tpu.memory_space<vmem>>, vector<1x8x128xf32>,
    %c0_25 = arith.constant 0 : index
    %c32 = arith.constant 32 : index
    %c0_26 = arith.constant 0 : index
    %47 = vector.load %arg5[%c0_25, %c32, %c0_26] : memref<1x48x128xf32, #tpu.memory_space<vmem>>, vector<1x8x128xf32>
    %48 = vector.shape_cast %47 : vector<1x8x128xf32> to vector<8x128xf32>
    %49 = vector.shape_cast %31 : vector<8x128xf32> to vector<1x8x128xf32>
    tpu.vector_store %arg5[%c0_25, %c32, %c0_26], %49 {strides = array<i32>} : memref<1x48x128xf32, #tpu.memory_space<vmem>>, vector<1x8x128xf32>,
    %c0_27 = arith.constant 0 : index
    %c40 = arith.constant 40 : index
    %c0_28 = arith.constant 0 : index
    %50 = vector.load %arg5[%c0_27, %c40, %c0_28] : memref<1x48x128xf32, #tpu.memory_space<vmem>>, vector<1x8x128xf32>
    %51 = vector.shape_cast %50 : vector<1x8x128xf32> to vector<8x128xf32>
    %52 = vector.shape_cast %34 : vector<8x128xf32> to vector<1x8x128xf32>
    tpu.vector_store %arg5[%c0_27, %c40, %c0_28], %52 {strides = array<i32>} : memref<1x48x128xf32, #tpu.memory_space<vmem>>, vector<1x8x128xf32>,
    return
  }
  func.func @transform_0(%arg0: i32) -> (i32, i32) {
    %c0_i32 = arith.constant 0 : i32
    %c0_i32_0 = arith.constant 0 : i32
    return %arg0, %c0_i32 : i32, i32
  }
  func.func @transform_1(%arg0: i32) -> (i32, i32) {
    %c0_i32 = arith.constant 0 : i32
    %c0_i32_0 = arith.constant 0 : i32
    return %arg0, %c0_i32 : i32, i32
  }
  func.func @transform_2(%arg0: i32) -> (i32, i32) {
    %c0_i32 = arith.constant 0 : i32
    %c0_i32_0 = arith.constant 0 : i32
    return %arg0, %c0_i32 : i32, i32
  }
  func.func @transform_3(%arg0: i32) -> (i32, i32) {
    %c0_i32 = arith.constant 0 : i32
    %c0_i32_0 = arith.constant 0 : i32
    return %arg0, %c0_i32 : i32, i32
  }
  func.func @transform_4(%arg0: i32) -> (i32, i32, i32) {
    %c0_i32 = arith.constant 0 : i32
    %c0_i32_0 = arith.constant 0 : i32
    %c0_i32_1 = arith.constant 0 : i32
    return %arg0, %c0_i32, %c0_i32_0 : i32, i32, i32
  }
}

</mosaic_0001>

<bundles_post_ra>
// kernel: my_bceloss12_n.1
= control target key start
LH: loop header
LB: loop body
LE: loop exit
PB: predicated region body
PF: predicated region fallthrough
CT: control target
= control target key end

     0   :  { %s164_s1 = inlined_call_operand.vmem [shape: f32[16,128], index: 1, kind: input, shape index: {}]   ;;  %s165_s0 = inlined_call_operand.vmem [shape: f32[16,128], index: 0, kind: input, shape index: {}]   ;;  %s166_s4 = inlined_call_operand.vmem [shape: f32[1,48,128], index: 4, kind: output, shape index: {}]   ;;  %s167_s3 = inlined_call_operand.vmem [shape: f32[16,128], index: 3, kind: input, shape index: {}]   ;;  %s168_s2 = inlined_call_operand.vmem [shape: f32[16,128], index: 2, kind: input, shape index: {}]  }
   0x1   :  { %v19_v0 = vld [vmem:[%s164_s1] sm:$0xff]  ;;  %v20_v1 = vld [vmem:[%s164_s1 + $0x8] sm:$0xff] }
   0x2   :  { %v17_v2 = vld [vmem:[%s165_s0] sm:$0xff]  ;;  %v67_v3 = vadd.f32 %v20_v1, %v19_v0  ;;  %v18_v4 = vld [vmem:[%s165_s0 + $0x8] sm:$0xff]  ;;  %v57_v23 = vsub.f32 1.0, %v19_v0  ;;  %v58_v24 = vsub.f32 1.0, %v20_v1 }
   0x3   :  { %v25_v5 = vand.u32 2147483647, %v17_v2  ;;  %v26_v6 = vand.u32 2147483647, %v18_v4  ;;  %v51_v20 = vsub.f32 0.0, %v17_v2  ;;  %v52_v22 = vsub.f32 0.0, %v18_v4 }
   0x4   :  { %79 = vst [vmem:[%s166_s4] sm:$0xff] %v67_v3  ;;  %v59_v33 = vmul.f32 %v57_v23, %v17_v2  ;;  %v60_v35 = vmul.f32 %v58_v24, %v18_v4  ;;  %v23_v43 = vld [vmem:[%s167_s3] sm:$0xff]  ;;  %v24_v45 = vld [vmem:[%s167_s3 + $0x8] sm:$0xff] }
   0x5   :  { %v27_v7 = vsub.f32 0.0, %v25_v5  ;;  %v28_v8 = vsub.f32 0.0, %v26_v6  ;;  %v53_v28 = vmax.f32 %v51_v20, 0.0  ;;  %v54_v31 = vmax.f32 %v52_v22, 0.0  ;;  %v21_v49 = vld [vmem:[%s168_s2] sm:$0xff]  ;;  %v22_v51 = vld [vmem:[%s168_s2 + $0x8] sm:$0xff] }
   0x7   :  { %v29_v9 = vmul.f32 1.442695, %v27_v7  ;;  %v31_v10 = vmul.f32 1.442695, %v28_v8 }
   0x9   :  { %89 = vpow2.f32 %v29_v9 }
   0xa   :  { %91 = vpow2.f32 %v31_v10 }
  0x13   :  { %v90_v11 = vpop.eup %89 }
  0x14   :  { %v92_v12 = vpop.eup %91  ;;  %v33_v13 = vadd.f32 1.0, %v90_v11  ;;  %v36_v15 = vmul.f32 -0.5, %v90_v11  ;;  %v39_v18 = vand.u32 2147483647, %v90_v11 }
  0x15   :  { %v42_v14 = vadd.f32 1.0, %v92_v12  ;;  %v45_v16 = vmul.f32 -0.5, %v92_v12  ;;  %v48_v21 = vand.u32 2147483647, %v92_v12 }
  0x16   :  { %93 = vlog2.f32 %v33_v13  ;;  %v37_v17 = vadd.f32 1.0, %v36_v15  ;;  %vm40_vm0 = vcmp.lt.f32.partialorder %v39_v18, 0.0004427343 }
  0x17   :  { %95 = vlog2.f32 %v42_v14  ;;  %v46_v19 = vadd.f32 1.0, %v45_v16  ;;  %vm49_vm1 = vcmp.lt.f32.partialorder %v48_v21, 0.0004427343 }
  0x18   :  { %v38_v25 = vmul.f32 %v90_v11, %v37_v17 }
  0x19   :  { %v47_v27 = vmul.f32 %v92_v12, %v46_v19 }
  0x20   :  { %v94_v26 = vpop.eup %93 }
  0x21   :  { %v96_v29 = vpop.eup %95  ;;  %v35_v30 = vmul.f32 0.6931472, %v94_v26 }
  0x22   :  { %v44_v32 = vmul.f32 0.6931472, %v96_v29 }
  0x23   :  { %v41_v34 = vsel %vm40_vm0, %v38_v25, %v35_v30 }
  0x24   :  { %v50_v36 = vsel %vm49_vm1, %v47_v27, %v44_v32  ;;  %v55_v37 = vadd.f32 %v53_v28, %v41_v34 }
  0x25   :  { %v56_v38 = vadd.f32 %v54_v31, %v50_v36 }
  0x26   :  { %v61_v39 = vadd.f32 %v59_v33, %v55_v37  ;;  %v69_v40 = vmul.f32 %v55_v37, %v19_v0 }
  0x27   :  { %v62_v41 = vadd.f32 %v60_v35, %v56_v38  ;;  %v70_v42 = vmul.f32 %v56_v38, %v20_v1 }
  0x28   :  { %v63_v44 = vmul.f32 %v61_v39, %v19_v0 }
  0x29   :  { %v68_v46 = vadd.f32 %v62_v41, %v61_v39  ;;  %v71_v47 = vadd.f32 %v70_v42, %v69_v40  ;;  %v64_v48 = vmul.f32 %v62_v41, %v20_v1 }
  0x2a   :  { %v73_v50 = vmul.f32 %v63_v44, %v23_v43  ;;  %v65_v52 = vsub.f32 %v61_v39, %v63_v44 }
  0x2b   :  { %80 = vst [vmem:[%s166_s4 + $0x8] sm:$0xff] %v68_v46  ;;  %81 = vst [vmem:[%s166_s4 + $0x10] sm:$0xff] %v71_v47  ;;  %v72_v53 = vadd.f32 %v64_v48, %v63_v44  ;;  %v74_v54 = vmul.f32 %v64_v48, %v24_v45  ;;  %v66_v55 = vsub.f32 %v62_v41, %v64_v48 }
  0x2c   :  { %v76_v56 = vmul.f32 %v65_v52, %v21_v49 }
  0x2d   :  { %82 = vst [vmem:[%s166_s4 + $0x18] sm:$0xff] %v72_v53  ;;  %v75_v57 = vadd.f32 %v74_v54, %v73_v50  ;;  %v77_v58 = vmul.f32 %v66_v55, %v22_v51 }
  0x2f   :  { %83 = vst [vmem:[%s166_s4 + $0x20] sm:$0xff] %v75_v57  ;;  %v78_v59 = vadd.f32 %v77_v58, %v76_v56 }
  0x31   :  { %84 = vst [vmem:[%s166_s4 + $0x28] sm:$0xff] %v78_v59 }

</bundles_post_ra>
